<compile_context>
chip_gen: v5e
topology: v5e:2x2
jax: 0.10.0
libtpu: 0.0.40
codegen_flags: <defaults>
</compile_context>

<pallas_src>
import functools

import numpy as np
import jax
import jax.numpy as jnp
from jax.experimental import pallas as pl
from jax.experimental.pallas import tpu as pltpu

EPS = 1e-5
KS = 3  # 3x3 convolution, 'same' zero padding, no bias


# ---------------------------------------------------------------------------
# Fused kernel: BN1 -> ReLU -> Conv1 -> BN2 -> ReLU -> Conv2, all in VMEM
# ---------------------------------------------------------------------------
def _qvb_kernel(x_ref, bn_ref, w1_ref, w2_ref, mask_ref, o_ref, *,
                n_batch, chan, height, width):
    # x_ref   : (S, P)   S = N*C sublane-folded rows (s = n*C + c), P = H*W in lanes
    # bn_ref  : (S, 4)   columns: gamma1, beta1, gamma2, beta2 (already per-row)
    # w*_ref  : (S, 9*S) column block t = kron(I_N, torch_weight[:, :, t//3, t%3])
    # mask_ref: (9, P)   float 0/1 validity of tap t's neighbor at each output lane
    # o_ref   : (S, P)
    P = height * width
    inv_cnt = 1.0 / float(n_batch * P)

    x = x_ref[...]
    bn = bn_ref[...]
    masks = mask_ref[...]

    def channel_totals(v):
        # (S,1) per-row values -> (S,1) where each row holds its channel's total
        # (sum over the N batch rows sharing that channel).  Tiny single-vreg ops.
        blocks = [v[k * chan:(k + 1) * chan, :] for k in range(n_batch)]
        tot = blocks[0]
        for b in blocks[1:]:
            tot = tot + b                                    # (C, 1)
        return jnp.concatenate([tot] * n_batch, axis=0)      # (S, 1)

    def bn_relu(t, col):
        # Training-mode BatchNorm2d (biased variance, eps=1e-5) folded to a per-row
        # scale/shift, then ReLU.  One-pass moments: var = E[x^2] - mean^2.
        rs = jnp.sum(t, axis=1, keepdims=True)               # (S,1) lane reduce (XLU)
        rs2 = jnp.sum(t * t, axis=1, keepdims=True)          # (S,1) lane reduce (XLU)
        mean = channel_totals(rs) * inv_cnt
        var = channel_totals(rs2) * inv_cnt - mean * mean
        gamma = bn[:, col:col + 1]                           # (S,1)
        beta = bn[:, col + 1:col + 2]                        # (S,1)
        scale = gamma * jax.lax.rsqrt(var + EPS)
        shift = beta - mean * scale
        return jnp.maximum(t * scale + shift, 0.0)

    def conv3x3(act, wmat):
        # 'same' zero-padded 3x3 conv.  Spatial taps: lane roll by (dh-1)*W + (dw-1)
        # (rolled[p] = act[p + shift]) with wrap-around / out-of-image lanes zeroed by
        # the precomputed masks.  Channel mixing: one MXU matmul over the tap-stacked
        # operand; kron(I_N, w_tap) block weights keep batch rows independent.
        taps = []
        for t in range(KS * KS):
            dh, dw = t // KS - 1, t % KS - 1
            sft = dh * width + dw
            if sft == 0:
                taps.append(act)                              # center tap: no shift/mask
            else:
                rolled = pltpu.roll(act, shift=(-sft) % P, axis=1)
                taps.append(rolled * masks[t:t + 1, :])
        stacked = jnp.concatenate(taps, axis=0)               # (9*S, P), vreg-aligned
        return jnp.dot(wmat, stacked, preferred_element_type=jnp.float32)

    a1 = bn_relu(x, 0)
    y1 = conv3x3(a1, w1_ref[...])
    a2 = bn_relu(y1, 2)
    o_ref[...] = conv3x3(a2, w2_ref[...])


# ---------------------------------------------------------------------------
# Public wrapper: PyTorch-style NCHW / OIHW in, NCHW out
# ---------------------------------------------------------------------------
def quaternion_vector_block(x_nchw, gamma1, beta1, w1_oihw, gamma2, beta2, w2_oihw):
    n, c, h, w = x_nchw.shape
    s, p = n * c, h * w

    # Sublane-folded activations (row index = n*C + c): a free reshape of NCHW.
    x = x_nchw.reshape(s, p).astype(jnp.float32)

    # BN affine params per sublane row (row n*C + c -> param[c]), packed as (S, 4).
    def rows(v):
        return jnp.tile(jnp.asarray(v, jnp.float32), n)
    bn = jnp.stack([rows(gamma1), rows(beta1), rows(gamma2), rows(beta2)], axis=1)

    # Conv weights -> block matrices (S, 9*S): column block t = kron(I_N, w[:,:,kh,kw]).
    eye_n = jnp.eye(n, dtype=jnp.float32)

    def pack_w(w_oihw_):
        wt = jnp.asarray(w_oihw_, jnp.float32)
        return jnp.concatenate(
            [jnp.kron(eye_n, wt[:, :, t // KS, t % KS]) for t in range(KS * KS)],
            axis=1)

    w1p, w2p = pack_w(w1_oihw), pack_w(w2_oihw)

    # Per-tap boundary validity masks (compile-time constants, shared by both convs).
    hh, ww = np.divmod(np.arange(p), w)
    masks = np.stack(
        [((hh + t // KS - 1 >= 0) & (hh + t // KS - 1 < h) &
          (ww + t % KS - 1 >= 0) & (ww + t % KS - 1 < w)).astype(np.float32)
         for t in range(KS * KS)], axis=0)                    # (9, P)
    masks = jnp.asarray(masks)

    kernel = functools.partial(_qvb_kernel, n_batch=n, chan=c, height=h, width=w)
    out = pl.pallas_call(
        kernel,
        out_shape=jax.ShapeDtypeStruct((s, p), jnp.float32),
        grid=(1,),
        in_specs=[
            pl.BlockSpec((s, p), lambda i: (0, 0)),
            pl.BlockSpec((s, 4), lambda i: (0, 0)),
            pl.BlockSpec((s, KS * KS * s), lambda i: (0, 0)),
            pl.BlockSpec((s, KS * KS * s), lambda i: (0, 0)),
            pl.BlockSpec((KS * KS, p), lambda i: (0, 0)),
        ],
        out_specs=pl.BlockSpec((s, p), lambda i: (0, 0)),
        compiler_params=pltpu.CompilerParams(dimension_semantics=("arbitrary",)),
    )(x, bn, w1p, w2p, masks)

    return out.reshape(n, c, h, w)
    # TODO(synk): BatchNorm running_mean / running_var buffer updates (training-mode
    # bookkeeping) are not modeled; they do not affect the forward output.


# ---------------------------------------------------------------------------
# Pure-JAX reference (training-mode BN, NCHW) for correctness checking
# ---------------------------------------------------------------------------
def ref_forward(x, gamma1, beta1, w1, gamma2, beta2, w2):
    def bn(t, gamma, beta):
        mean = jnp.mean(t, axis=(0, 2, 3), keepdims=True)
        var = jnp.mean((t - mean) ** 2, axis=(0, 2, 3), keepdims=True)
        return gamma[None, :, None, None] * (t - mean) / jnp.sqrt(var + EPS) \
            + beta[None, :, None, None]

    def conv(t, wt):
        return jax.lax.conv_general_dilated(
            t, wt, window_strides=(1, 1), padding="SAME",
            dimension_numbers=("NCHW", "OIHW", "NCHW"))

    out = conv(jnp.maximum(bn(x, gamma1, beta1), 0.0), w1)
    out = conv(jnp.maximum(bn(out, gamma2, beta2), 0.0), w2)
    return out


if __name__ == "__main__":
    key = jax.random.PRNGKey(0)
    k_x, k_w1, k_w2 = jax.random.split(key, 3)

    N, C, H, W = 2, 4, 16, 16
    x = jax.random.normal(k_x, (N, C, H, W), dtype=jnp.float32)
    # conv weights (PyTorch OIHW shape: (out_c, in_c, kh, kw))
    w1 = 0.2 * jax.random.normal(k_w1, (C, C, KS, KS), dtype=jnp.float32)
    w2 = 0.2 * jax.random.normal(k_w2, (C, C, KS, KS), dtype=jnp.float32)
    # BN affine params (deterministic, non-trivial)
    gamma1 = 1.0 + 0.10 * jnp.arange(C, dtype=jnp.float32)
    beta1 = 0.05 * jnp.arange(C, dtype=jnp.float32)
    gamma2 = 1.0 - 0.05 * jnp.arange(C, dtype=jnp.float32)
    beta2 = -0.02 * jnp.arange(C, dtype=jnp.float32)

    out = quaternion_vector_block(x, gamma1, beta1, w1, gamma2, beta2, w2)
    out = jax.block_until_ready(out)

    ref = ref_forward(x, gamma1, beta1, w1, gamma2, beta2, w2)
    assert out.shape == ref.shape, (out.shape, ref.shape)
    max_err = float(jnp.max(jnp.abs(out - ref)))
    assert jnp.allclose(out, ref, atol=2e-3, rtol=2e-3), f"max abs err = {max_err}"

    print("KERNEL_OK")
</pallas_src>

<mosaic_0001>
module attributes {stable_mosaic.version = 11 : i64} {
  func.func @_qvb_kernel(%arg0: i32, %arg1: memref<8x256xf32, #tpu.memory_space<vmem>>, %arg2: memref<8x4xf32, #tpu.memory_space<vmem>>, %arg3: memref<8x72xf32, #tpu.memory_space<vmem>>, %arg4: memref<8x72xf32, #tpu.memory_space<vmem>>, %arg5: memref<9x256xf32, #tpu.memory_space<vmem>>, %arg6: memref<8x256xf32, #tpu.memory_space<vmem>>) attributes {dimension_semantics = [#tpu.dimension_semantics<arbitrary>], iteration_bounds = array<i64: 1>, scalar_prefetch = 0 : i64, scratch_operands = 0 : i64, tpu.core_type = #tpu.core_type<tc>, window_params = [{pipeline_mode = #tpu.pipeline_mode<synchronous>, transform_indices = @transform_0, window_bounds = array<i64: 8, 256>}, {pipeline_mode = #tpu.pipeline_mode<synchronous>, transform_indices = @transform_1, window_bounds = array<i64: 8, 4>}, {pipeline_mode = #tpu.pipeline_mode<synchronous>, transform_indices = @transform_2, window_bounds = array<i64: 8, 72>}, {pipeline_mode = #tpu.pipeline_mode<synchronous>, transform_indices = @transform_3, window_bounds = array<i64: 8, 72>}, {pipeline_mode = #tpu.pipeline_mode<synchronous>, transform_indices = @transform_4, window_bounds = array<i64: 9, 256>}, {pipeline_mode = #tpu.pipeline_mode<synchronous>, transform_indices = @transform_5, window_bounds = array<i64: 8, 256>}]} {
    %c0 = arith.constant 0 : index
    %c0_0 = arith.constant 0 : index
    %0 = vector.load %arg1[%c0, %c0_0] : memref<8x256xf32, #tpu.memory_space<vmem>>, vector<8x256xf32>
    %c0_1 = arith.constant 0 : index
    %c0_2 = arith.constant 0 : index
    %1 = vector.load %arg2[%c0_1, %c0_2] : memref<8x4xf32, #tpu.memory_space<vmem>>, vector<8x4xf32>
    %c0_3 = arith.constant 0 : index
    %c0_4 = arith.constant 0 : index
    %2 = vector.load %arg5[%c0_3, %c0_4] : memref<9x256xf32, #tpu.memory_space<vmem>>, vector<9x256xf32>
    %cst = arith.constant dense<0.000000e+00> : vector<8xf32>
    %3 = vector.multi_reduction <add>, %0, %cst [1] : vector<8x256xf32> to vector<8xf32>
    %4 = vector.shape_cast %3 : vector<8xf32> to vector<8x1xf32>
    %5 = arith.mulf %0, %0 : vector<8x256xf32>
    %cst_5 = arith.constant dense<0.000000e+00> : vector<8xf32>
    %6 = vector.multi_reduction <add>, %5, %cst_5 [1] : vector<8x256xf32> to vector<8xf32>
    %7 = vector.shape_cast %6 : vector<8xf32> to vector<8x1xf32>
    %8 = vector.extract_strided_slice %4 {offsets = [0, 0], sizes = [4, 1], strides = [1, 1]} : vector<8x1xf32> to vector<4x1xf32>
    %9 = vector.extract_strided_slice %4 {offsets = [4, 0], sizes = [4, 1], strides = [1, 1]} : vector<8x1xf32> to vector<4x1xf32>
    %10 = arith.addf %8, %9 : vector<4x1xf32>
    %11 = tpu.concatenate %10, %10 in 0 : vector<4x1xf32>, vector<4x1xf32> -> vector<8x1xf32>
    %cst_6 = arith.constant 0.001953125 : f32
    %12 = vector.broadcast %cst_6 : f32 to vector<8x1xf32>
    %13 = arith.mulf %11, %12 : vector<8x1xf32>
    %14 = vector.extract_strided_slice %7 {offsets = [0, 0], sizes = [4, 1], strides = [1, 1]} : vector<8x1xf32> to vector<4x1xf32>
    %15 = vector.extract_strided_slice %7 {offsets = [4, 0], sizes = [4, 1], strides = [1, 1]} : vector<8x1xf32> to vector<4x1xf32>
    %16 = arith.addf %14, %15 : vector<4x1xf32>
    %17 = tpu.concatenate %16, %16 in 0 : vector<4x1xf32>, vector<4x1xf32> -> vector<8x1xf32>
    %cst_7 = arith.constant 0.001953125 : f32
    %18 = vector.broadcast %cst_7 : f32 to vector<8x1xf32>
    %19 = arith.mulf %17, %18 : vector<8x1xf32>
    %20 = arith.mulf %13, %13 : vector<8x1xf32>
    %21 = arith.subf %19, %20 : vector<8x1xf32>
    %22 = vector.extract_strided_slice %1 {offsets = [0, 0], sizes = [8, 1], strides = [1, 1]} : vector<8x4xf32> to vector<8x1xf32>
    %23 = vector.extract_strided_slice %1 {offsets = [0, 1], sizes = [8, 1], strides = [1, 1]} : vector<8x4xf32> to vector<8x1xf32>
    %cst_8 = arith.constant 9.99999974E-6 : f32
    %24 = vector.broadcast %cst_8 : f32 to vector<8x1xf32>
    %25 = arith.addf %21, %24 : vector<8x1xf32>
    %26 = math.rsqrt %25 : vector<8x1xf32>
    %27 = arith.mulf %22, %26 : vector<8x1xf32>
    %28 = arith.mulf %13, %27 : vector<8x1xf32>
    %29 = arith.subf %23, %28 : vector<8x1xf32>
    %30 = vector.broadcast %27 : vector<8x1xf32> to vector<8x256xf32>
    %31 = arith.mulf %0, %30 : vector<8x256xf32>
    %32 = vector.broadcast %29 : vector<8x1xf32> to vector<8x256xf32>
    %33 = arith.addf %31, %32 : vector<8x256xf32>
    %cst_9 = arith.constant 0.000000e+00 : f32
    %34 = vector.broadcast %cst_9 : f32 to vector<8x256xf32>
    %35 = arith.maximumf %33, %34 : vector<8x256xf32>
    %c0_10 = arith.constant 0 : index
    %c0_11 = arith.constant 0 : index
    %36 = vector.load %arg3[%c0_10, %c0_11] : memref<8x72xf32, #tpu.memory_space<vmem>>, vector<8x72xf32>
    %c17_i32 = arith.constant 17 : i32
    %37 = tpu.dynamic_rotate %35 by %c17_i32 dim 1 : vector<8x256xf32>, i32 -> vector<8x256xf32>
    %38 = vector.extract_strided_slice %2 {offsets = [0, 0], sizes = [1, 256], strides = [1, 1]} : vector<9x256xf32> to vector<1x256xf32>
    %39 = vector.broadcast %38 : vector<1x256xf32> to vector<8x256xf32>
    %40 = arith.mulf %37, %39 : vector<8x256xf32>
    %c16_i32 = arith.constant 16 : i32
    %41 = tpu.dynamic_rotate %35 by %c16_i32 dim 1 : vector<8x256xf32>, i32 -> vector<8x256xf32>
    %42 = vector.extract_strided_slice %2 {offsets = [1, 0], sizes = [1, 256], strides = [1, 1]} : vector<9x256xf32> to vector<1x256xf32>
    %43 = vector.broadcast %42 : vector<1x256xf32> to vector<8x256xf32>
    %44 = arith.mulf %41, %43 : vector<8x256xf32>
    %c15_i32 = arith.constant 15 : i32
    %45 = tpu.dynamic_rotate %35 by %c15_i32 dim 1 : vector<8x256xf32>, i32 -> vector<8x256xf32>
    %46 = vector.extract_strided_slice %2 {offsets = [2, 0], sizes = [1, 256], strides = [1, 1]} : vector<9x256xf32> to vector<1x256xf32>
    %47 = vector.broadcast %46 : vector<1x256xf32> to vector<8x256xf32>
    %48 = arith.mulf %45, %47 : vector<8x256xf32>
    %c1_i32 = arith.constant 1 : i32
    %49 = tpu.dynamic_rotate %35 by %c1_i32 dim 1 : vector<8x256xf32>, i32 -> vector<8x256xf32>
    %50 = vector.extract_strided_slice %2 {offsets = [3, 0], sizes = [1, 256], strides = [1, 1]} : vector<9x256xf32> to vector<1x256xf32>
    %51 = vector.broadcast %50 : vector<1x256xf32> to vector<8x256xf32>
    %52 = arith.mulf %49, %51 : vector<8x256xf32>
    %c255_i32 = arith.constant 255 : i32
    %53 = tpu.dynamic_rotate %35 by %c255_i32 dim 1 : vector<8x256xf32>, i32 -> vector<8x256xf32>
    %54 = vector.extract_strided_slice %2 {offsets = [5, 0], sizes = [1, 256], strides = [1, 1]} : vector<9x256xf32> to vector<1x256xf32>
    %55 = vector.broadcast %54 : vector<1x256xf32> to vector<8x256xf32>
    %56 = arith.mulf %53, %55 : vector<8x256xf32>
    %c241_i32 = arith.constant 241 : i32
    %57 = tpu.dynamic_rotate %35 by %c241_i32 dim 1 : vector<8x256xf32>, i32 -> vector<8x256xf32>
    %58 = vector.extract_strided_slice %2 {offsets = [6, 0], sizes = [1, 256], strides = [1, 1]} : vector<9x256xf32> to vector<1x256xf32>
    %59 = vector.broadcast %58 : vector<1x256xf32> to vector<8x256xf32>
    %60 = arith.mulf %57, %59 : vector<8x256xf32>
    %c240_i32 = arith.constant 240 : i32
    %61 = tpu.dynamic_rotate %35 by %c240_i32 dim 1 : vector<8x256xf32>, i32 -> vector<8x256xf32>
    %62 = vector.extract_strided_slice %2 {offsets = [7, 0], sizes = [1, 256], strides = [1, 1]} : vector<9x256xf32> to vector<1x256xf32>
    %63 = vector.broadcast %62 : vector<1x256xf32> to vector<8x256xf32>
    %64 = arith.mulf %61, %63 : vector<8x256xf32>
    %c239_i32 = arith.constant 239 : i32
    %65 = tpu.dynamic_rotate %35 by %c239_i32 dim 1 : vector<8x256xf32>, i32 -> vector<8x256xf32>
    %66 = vector.extract_strided_slice %2 {offsets = [8, 0], sizes = [1, 256], strides = [1, 1]} : vector<9x256xf32> to vector<1x256xf32>
    %67 = vector.broadcast %66 : vector<1x256xf32> to vector<8x256xf32>
    %68 = arith.mulf %65, %67 : vector<8x256xf32>
    %69 = tpu.concatenate %40, %44, %48, %52, %35, %56, %60, %64, %68 in 0 : vector<8x256xf32>, vector<8x256xf32>, vector<8x256xf32>, vector<8x256xf32>, vector<8x256xf32>, vector<8x256xf32>, vector<8x256xf32>, vector<8x256xf32>, vector<8x256xf32> -> vector<72x256xf32>
    %cst_12 = arith.constant dense<0.000000e+00> : vector<8x256xf32>
    %70 = tpu.matmul %36, %69, %cst_12 {dimension_numbers = #tpu.dot_dimension_numbers<[1], [0], [0], [1], [0, 0, 1, 1], [], []>} : vector<8x72xf32>, vector<72x256xf32>, vector<8x256xf32> -> vector<8x256xf32>
    %cst_13 = arith.constant dense<0.000000e+00> : vector<8xf32>
    %71 = vector.multi_reduction <add>, %70, %cst_13 [1] : vector<8x256xf32> to vector<8xf32>
    %72 = vector.shape_cast %71 : vector<8xf32> to vector<8x1xf32>
    %73 = arith.mulf %70, %70 : vector<8x256xf32>
    %cst_14 = arith.constant dense<0.000000e+00> : vector<8xf32>
    %74 = vector.multi_reduction <add>, %73, %cst_14 [1] : vector<8x256xf32> to vector<8xf32>
    %75 = vector.shape_cast %74 : vector<8xf32> to vector<8x1xf32>
    %76 = vector.extract_strided_slice %72 {offsets = [0, 0], sizes = [4, 1], strides = [1, 1]} : vector<8x1xf32> to vector<4x1xf32>
    %77 = vector.extract_strided_slice %72 {offsets = [4, 0], sizes = [4, 1], strides = [1, 1]} : vector<8x1xf32> to vector<4x1xf32>
    %78 = arith.addf %76, %77 : vector<4x1xf32>
    %79 = tpu.concatenate %78, %78 in 0 : vector<4x1xf32>, vector<4x1xf32> -> vector<8x1xf32>
    %cst_15 = arith.constant 0.001953125 : f32
    %80 = vector.broadcast %cst_15 : f32 to vector<8x1xf32>
    %81 = arith.mulf %79, %80 : vector<8x1xf32>
    %82 = vector.extract_strided_slice %75 {offsets = [0, 0], sizes = [4, 1], strides = [1, 1]} : vector<8x1xf32> to vector<4x1xf32>
    %83 = vector.extract_strided_slice %75 {offsets = [4, 0], sizes = [4, 1], strides = [1, 1]} : vector<8x1xf32> to vector<4x1xf32>
    %84 = arith.addf %82, %83 : vector<4x1xf32>
    %85 = tpu.concatenate %84, %84 in 0 : vector<4x1xf32>, vector<4x1xf32> -> vector<8x1xf32>
    %cst_16 = arith.constant 0.001953125 : f32
    %86 = vector.broadcast %cst_16 : f32 to vector<8x1xf32>
    %87 = arith.mulf %85, %86 : vector<8x1xf32>
    %88 = arith.mulf %81, %81 : vector<8x1xf32>
    %89 = arith.subf %87, %88 : vector<8x1xf32>
    %90 = vector.extract_strided_slice %1 {offsets = [0, 2], sizes = [8, 1], strides = [1, 1]} : vector<8x4xf32> to vector<8x1xf32>
    %91 = vector.extract_strided_slice %1 {offsets = [0, 3], sizes = [8, 1], strides = [1, 1]} : vector<8x4xf32> to vector<8x1xf32>
    %cst_17 = arith.constant 9.99999974E-6 : f32
    %92 = vector.broadcast %cst_17 : f32 to vector<8x1xf32>
    %93 = arith.addf %89, %92 : vector<8x1xf32>
    %94 = math.rsqrt %93 : vector<8x1xf32>
    %95 = arith.mulf %90, %94 : vector<8x1xf32>
    %96 = arith.mulf %81, %95 : vector<8x1xf32>
    %97 = arith.subf %91, %96 : vector<8x1xf32>
    %98 = vector.broadcast %95 : vector<8x1xf32> to vector<8x256xf32>
    %99 = arith.mulf %70, %98 : vector<8x256xf32>
    %100 = vector.broadcast %97 : vector<8x1xf32> to vector<8x256xf32>
    %101 = arith.addf %99, %100 : vector<8x256xf32>
    %cst_18 = arith.constant 0.000000e+00 : f32
    %102 = vector.broadcast %cst_18 : f32 to vector<8x256xf32>
    %103 = arith.maximumf %101, %102 : vector<8x256xf32>
    %c0_19 = arith.constant 0 : index
    %c0_20 = arith.constant 0 : index
    %104 = vector.load %arg4[%c0_19, %c0_20] : memref<8x72xf32, #tpu.memory_space<vmem>>, vector<8x72xf32>
    %c17_i32_21 = arith.constant 17 : i32
    %105 = tpu.dynamic_rotate %103 by %c17_i32_21 dim 1 : vector<8x256xf32>, i32 -> vector<8x256xf32>
    %106 = vector.extract_strided_slice %2 {offsets = [0, 0], sizes = [1, 256], strides = [1, 1]} : vector<9x256xf32> to vector<1x256xf32>
    %107 = vector.broadcast %106 : vector<1x256xf32> to vector<8x256xf32>
    %108 = arith.mulf %105, %107 : vector<8x256xf32>
    %c16_i32_22 = arith.constant 16 : i32
    %109 = tpu.dynamic_rotate %103 by %c16_i32_22 dim 1 : vector<8x256xf32>, i32 -> vector<8x256xf32>
    %110 = vector.extract_strided_slice %2 {offsets = [1, 0], sizes = [1, 256], strides = [1, 1]} : vector<9x256xf32> to vector<1x256xf32>
    %111 = vector.broadcast %110 : vector<1x256xf32> to vector<8x256xf32>
    %112 = arith.mulf %109, %111 : vector<8x256xf32>
    %c15_i32_23 = arith.constant 15 : i32
    %113 = tpu.dynamic_rotate %103 by %c15_i32_23 dim 1 : vector<8x256xf32>, i32 -> vector<8x256xf32>
    %114 = vector.extract_strided_slice %2 {offsets = [2, 0], sizes = [1, 256], strides = [1, 1]} : vector<9x256xf32> to vector<1x256xf32>
    %115 = vector.broadcast %114 : vector<1x256xf32> to vector<8x256xf32>
    %116 = arith.mulf %113, %115 : vector<8x256xf32>
    %c1_i32_24 = arith.constant 1 : i32
    %117 = tpu.dynamic_rotate %103 by %c1_i32_24 dim 1 : vector<8x256xf32>, i32 -> vector<8x256xf32>
    %118 = vector.extract_strided_slice %2 {offsets = [3, 0], sizes = [1, 256], strides = [1, 1]} : vector<9x256xf32> to vector<1x256xf32>
    %119 = vector.broadcast %118 : vector<1x256xf32> to vector<8x256xf32>
    %120 = arith.mulf %117, %119 : vector<8x256xf32>
    %c255_i32_25 = arith.constant 255 : i32
    %121 = tpu.dynamic_rotate %103 by %c255_i32_25 dim 1 : vector<8x256xf32>, i32 -> vector<8x256xf32>
    %122 = vector.extract_strided_slice %2 {offsets = [5, 0], sizes = [1, 256], strides = [1, 1]} : vector<9x256xf32> to vector<1x256xf32>
    %123 = vector.broadcast %122 : vector<1x256xf32> to vector<8x256xf32>
    %124 = arith.mulf %121, %123 : vector<8x256xf32>
    %c241_i32_26 = arith.constant 241 : i32
    %125 = tpu.dynamic_rotate %103 by %c241_i32_26 dim 1 : vector<8x256xf32>, i32 -> vector<8x256xf32>
    %126 = vector.extract_strided_slice %2 {offsets = [6, 0], sizes = [1, 256], strides = [1, 1]} : vector<9x256xf32> to vector<1x256xf32>
    %127 = vector.broadcast %126 : vector<1x256xf32> to vector<8x256xf32>
    %128 = arith.mulf %125, %127 : vector<8x256xf32>
    %c240_i32_27 = arith.constant 240 : i32
    %129 = tpu.dynamic_rotate %103 by %c240_i32_27 dim 1 : vector<8x256xf32>, i32 -> vector<8x256xf32>
    %130 = vector.extract_strided_slice %2 {offsets = [7, 0], sizes = [1, 256], strides = [1, 1]} : vector<9x256xf32> to vector<1x256xf32>
    %131 = vector.broadcast %130 : vector<1x256xf32> to vector<8x256xf32>
    %132 = arith.mulf %129, %131 : vector<8x256xf32>
    %c239_i32_28 = arith.constant 239 : i32
    %133 = tpu.dynamic_rotate %103 by %c239_i32_28 dim 1 : vector<8x256xf32>, i32 -> vector<8x256xf32>
    %134 = vector.extract_strided_slice %2 {offsets = [8, 0], sizes = [1, 256], strides = [1, 1]} : vector<9x256xf32> to vector<1x256xf32>
    %135 = vector.broadcast %134 : vector<1x256xf32> to vector<8x256xf32>
    %136 = arith.mulf %133, %135 : vector<8x256xf32>
    %137 = tpu.concatenate %108, %112, %116, %120, %103, %124, %128, %132, %136 in 0 : vector<8x256xf32>, vector<8x256xf32>, vector<8x256xf32>, vector<8x256xf32>, vector<8x256xf32>, vector<8x256xf32>, vector<8x256xf32>, vector<8x256xf32>, vector<8x256xf32> -> vector<72x256xf32>
    %cst_29 = arith.constant dense<0.000000e+00> : vector<8x256xf32>
    %138 = tpu.matmul %104, %137, %cst_29 {dimension_numbers = #tpu.dot_dimension_numbers<[1], [0], [0], [1], [0, 0, 1, 1], [], []>} : vector<8x72xf32>, vector<72x256xf32>, vector<8x256xf32> -> vector<8x256xf32>
    %c0_30 = arith.constant 0 : index
    %c0_31 = arith.constant 0 : index
    %139 = vector.load %arg6[%c0_30, %c0_31] : memref<8x256xf32, #tpu.memory_space<vmem>>, vector<8x256xf32>
    tpu.vector_store %arg6[%c0_30, %c0_31], %138 {strides = array<i32>} : memref<8x256xf32, #tpu.memory_space<vmem>>, vector<8x256xf32>,
    return
  }
  func.func @transform_0(%arg0: i32) -> (i32, i32) {
    %c0_i32 = arith.constant 0 : i32
    %c0_i32_0 = arith.constant 0 : i32
    %c0_i32_1 = arith.constant 0 : i32
    return %c0_i32, %c0_i32_0 : i32, i32
  }
  func.func @transform_1(%arg0: i32) -> (i32, i32) {
    %c0_i32 = arith.constant 0 : i32
    %c0_i32_0 = arith.constant 0 : i32
    %c0_i32_1 = arith.constant 0 : i32
    return %c0_i32, %c0_i32_0 : i32, i32
  }
  func.func @transform_2(%arg0: i32) -> (i32, i32) {
    %c0_i32 = arith.constant 0 : i32
    %c0_i32_0 = arith.constant 0 : i32
    %c0_i32_1 = arith.constant 0 : i32
    return %c0_i32, %c0_i32_0 : i32, i32
  }
  func.func @transform_3(%arg0: i32) -> (i32, i32) {
    %c0_i32 = arith.constant 0 : i32
    %c0_i32_0 = arith.constant 0 : i32
    %c0_i32_1 = arith.constant 0 : i32
    return %c0_i32, %c0_i32_0 : i32, i32
  }
  func.func @transform_4(%arg0: i32) -> (i32, i32) {
    %c0_i32 = arith.constant 0 : i32
    %c0_i32_0 = arith.constant 0 : i32
    %c0_i32_1 = arith.constant 0 : i32
    return %c0_i32, %c0_i32_0 : i32, i32
  }
  func.func @transform_5(%arg0: i32) -> (i32, i32) {
    %c0_i32 = arith.constant 0 : i32
    %c0_i32_0 = arith.constant 0 : i32
    %c0_i32_1 = arith.constant 0 : i32
    return %c0_i32, %c0_i32_0 : i32, i32
  }
}

</mosaic_0001>

<bundles_post_ra>
// kernel: tpu_custom_call.1
= control target key start
LH: loop header
LB: loop body
LE: loop exit
PB: predicated region body
PF: predicated region fallthrough
CT: control target
= control target key end

     0   :  { %10 = vsyncpa [#allocation3], 0  ;;  %s897_s0 = inlined_call_operand.hbm [shape: f32[8,256], index: 0, kind: input, shape index: {}]   ;;  %s898_s1 = inlined_call_operand.vmem [shape: f32[8,4], index: 1, kind: input, shape index: {}]   ;;  %s899_s2 = inlined_call_operand.vmem [shape: f32[8,72], index: 2, kind: input, shape index: {}]   ;;  %s900_s3 = inlined_call_operand.hbm [shape: f32[8,72], index: 3, kind: input, shape index: {}]   ;;  %s901_s4 = inlined_call_operand.hbm [shape: f32[9,256], index: 4, kind: input, shape index: {}]   ;;  %s902_s5 = inlined_call_operand.hbm [shape: f32[8,256], index: 5, kind: output, shape index: {}]  }
   0x1   :  { %11 = vsyncpa [#allocation6], 0  ;;  %s33_s20 = sshll.u32 %s900_s3, 4  ;;  %s34_s20 = int_to_ptr.hbm [resolvable:$true] %s33_s20 }
   0x2   :  { %12 = vsyncpa [#allocation4], 0  ;;  %s603_s21 = smov [#allocation5]   ;;  %s18_s25 = sshll.u32 %s897_s0, 4  ;;  %s19_s25 = int_to_ptr.hbm [resolvable:$true] %s18_s25 }
   0x3   :  { %s35_s22 = sshll.u32 %s603_s21, 4  ;;  %s604_s26 = smov [#allocation2]   ;;  %s36_s22 = int_to_ptr.vmem [resolvable:$true] %s35_s22 }
   0x4   :  { %38 = dma.hbm_to_vmem [thread:$0]  %s34_s20, 128, %s36_s22, [#allocation6]  }
   0x5   :  { %s20_s27 = sshll.u32 %s604_s26, 4  ;;  %s43_s30 = sshll.u32 %s901_s4, 4  ;;  %s21_s27 = int_to_ptr.vmem [resolvable:$true] %s20_s27  ;;  %s44_s30 = int_to_ptr.hbm [resolvable:$true] %s43_s30 }
   0x6   :  { %23 = dma.hbm_to_vmem [thread:$0]  %s19_s25, 256, %s21_s27, [#allocation3]  }
   0x7   :  { %s605_s3 = smov [#allocation7]   ;;  %s606_s7 = smov 256  }
   0x8   :  { %s45_s6 = sshll.u32 %s605_s3, 4  ;;  %s607_s8 = smov 16   ;;  %s46_s6 = int_to_ptr.vmem [resolvable:$true] %s45_s6 }
   0x9   :  { %51 = dma.hbm_to_vmem [thread:$0]  %s44_s30, 512, %s46_s6, [#allocation6], %s606_s7, %s606_s7, %s607_s8  }
   0xa   :  { %597 = dma.done.wait [#allocation3], 256  }
   0xb   :  { %598 = vsyncadd [#allocation3], 4294967040 }
   0xc   :  { %599 = dma.done.wait [#allocation6], 640  }
   0xd   :  { %600 = vsyncadd [#allocation6], 4294966656  ;;  %v64_v0 = vld [vmem:[#allocation2] sm:$0xff]  ;;  %v65_v1 = vld [vmem:[#allocation2 + $0x8] sm:$0xff]  ;;  %vm86_vm0 = vcmask 1043456   ;;  %v608_v16 = vmov 0   ;;  %v139_v44 = vlaneseq }
   0xe   :  { %v71_v2 = vadd.f32 %v65_v1, %v64_v0  ;;  %v74_v3 = vmul.f32 %v64_v0, %v64_v0  ;;  %v75_v4 = vmul.f32 %v65_v1, %v65_v1  ;;  %490 = vset.pattern.permute.xlu1 %v608_v16  ;;  %v668_v27 = vld [vmem:[%s898_s1] sm:$0xff]  ;;  %s609_s9 = smov 1   ;;  %v610_v32 = vmov 1   ;;  %s611_s1 = smov 111   ;;  %v711_v47 = vld [vmem:[#allocation7] sm:$0xff] }
   0xf   :  { %491 = vset.pattern.permute.xlu2 %v610_v32  ;;  %s612_s10 = smov 112   ;;  %s613_s11 = smov 113   ;;  %v709_v46 = vand.u32 127, %v139_v44  ;;  %v713_v48 = vld [vmem:[#allocation7 + $0x8] sm:$0xff]  ;;  %v717_v49 = vld [vmem:[#allocation7 + $0x10] ss:$0 sm:$0xff] }
  0x10   :  { %72 = vadd.xlane.f32.xlu0 %v71_v2  ;;  %v76_v5 = vadd.f32 %v75_v4, %v74_v3  ;;  %s614_s12 = smov 15   ;;  %s615_s13 = smov 127   ;;  %v719_v50 = vld [vmem:[#allocation7 + $0x18] ss:$0 sm:$0xff]  ;;  %v210_v53 = vperm.slane %v711_v47, 7  ;;  %v211_v54 = vperm.slane %v713_v48, 7 }
  0x11   :  { %s616_s14 = smov 17   ;;  %vm207_vm4 = vcmp.lt.s32.totalorder %v709_v46, 112  ;;  %vm218_vm5 = vcmp.lt.s32.totalorder %v709_v46, 111  ;;  %vm196_vm6 = vcmp.lt.s32.totalorder %v709_v46, 113  ;;  %vm185_vm7 = vcmp.lt.s32.totalorder %v709_v46, 127  ;;  %s618_s17 = smov 126  }
  0x12   :  { %vm163_vm8 = vcmp.lt.s32.totalorder %v709_v46, 15  ;;  %vm174_vm9 = vcmp.lt.s32.totalorder %v709_v46, 1  ;;  %vm152_vm10 = vcmp.lt.s32.totalorder %v709_v46, 16  ;;  %v155_v32 = vperm.slane %v711_v47, 1  ;;  %s620_s18 = smov 3   ;;  %s622_s19 = smov [#allocation8]  }
  0x13   :  { %vm141_vm11 = vcmp.lt.s32.totalorder %v709_v46, 17  ;;  %vm225_vm12 = vcmask 588800   ;;  %s453_s20 = sshll.u32 %s622_s19, 4  ;;  %s455_s23 = sshll.u32 %s902_s5, 4  ;;  %s454_s20 = int_to_ptr.vmem [resolvable:$true] %s453_s20  ;;  %s456_s23 = int_to_ptr.hbm [resolvable:$true] %s455_s23 }
  0x18   :  { %77 = vadd.xlane.f32.xlu0 %v76_v5 }
  0x83   :  { %v73_v6 = vpop.xlane.xlu0 %72 }
  0x84   :  { %v80_v7 = vrot.slane %v73_v6, 4 }
  0x86   :  { %v82_v8 = vadd.f32 %v80_v7, %v73_v6 }
  0x88   :  { %v84_v9 = vrot.slane %v82_v8, 4 }
  0x8a   :  { %v87_v12 = vsel %vm86_vm0, %v82_v8, %v84_v9  ;;  %v188_v9 = vperm.slane %v711_v47, 5 }
  0x8b   :  { %v78_v10 = vpop.xlane.xlu0 %77  ;;  %v88_v14 = vmul.f32 0.001953125, %v87_v12 }
  0x8c   :  { %v90_v11 = vrot.slane %v78_v10, 4 }
  0x8d   :  { %v98_v19 = vmul.f32 %v88_v14, %v88_v14 }
  0x8e   :  { %v92_v13 = vadd.f32 %v90_v11, %v78_v10  ;;  %v189_v10 = vperm.slane %v713_v48, 5 }
  0x90   :  { %v94_v15 = vrot.slane %v92_v13, 4 }
  0x92   :  { %v96_v17 = vsel %vm86_vm0, %v92_v13, %v94_v15 }
  0x93   :  { %v97_v18 = vmul.f32 0.001953125, %v96_v17 }
  0x95   :  { %v99_v20 = vsub.f32 %v97_v18, %v98_v19  ;;  %v177_v18 = vperm.slane %v711_v47, 3  ;;  %v178_v19 = vperm.slane %v713_v48, 3 }
  0x97   :  { %v100_v21 = vadd.f32 1e-05, %v99_v20 }
  0x99   :  { %497 = vrsqrt.f32 %v100_v21  ;;  %vm107_vm2 = vweird.f32 %v100_v21 }
  0x9f   :  { %v498_v22 = vpop.eup %497 }
  0xa0   :  { %v102_v23 = vmul.f32 %v498_v22, %v100_v21  ;;  %vm108_vm1 = vweird.f32 %v498_v22  ;;  %v166_v21 = vperm.slane %v711_v47, 2 }
  0xa1   :  { %vm109_vm3 = vmor %vm107_vm2, %vm108_vm1 }
  0xa2   :  { %v103_v24 = vmul.f32 %v498_v22, %v102_v23 }
  0xa4   :  { %v104_v25 = vmul.f32 0.5, %v103_v24 }
  0xa6   :  { %v105_v26 = vsub.f32 1.5, %v104_v25 }
  0xa8   :  { %v106_v28 = vmul.f32 %v498_v22, %v105_v26 }
  0xaa   :  { %v110_v29 = vsel %vm109_vm3, %v498_v22, %v106_v28  ;;  %v167_v22 = vperm.slane %v713_v48, 2 }
  0xab   :  { %v111_v30 = vmul.f32 %v110_v29, %v668_v27 }
  0xad   :  { %v112_v31 = vmul.f32 %v111_v30, %v88_v14 }
  0xaf   :  { %114 = vrot.lane.b32.xlu1 %v112_v31, %s609_s9 }
  0xb7   :  { %120 = vperm.xlu1 %490, %v111_v30  }
 0x121   :  { %v115_v33 = vpop.permute.xlu1 %114 }
 0x122   :  { %v117_v34 = vsub.f32 %v668_v27, %v115_v33  ;;  %v156_v33 = vperm.slane %v713_v48, 1 }
 0x124   :  { %127 = vperm.xlu2 %491, %v117_v34  }
 0x129   :  { %v121_v35 = vpop.permute.xlu1 %120 }
 0x12a   :  { %v123_v36 = vmul.f32 %v121_v35, %v64_v0  ;;  %v124_v37 = vmul.f32 %v121_v35, %v65_v1  ;;  %v199_v0 = vperm.slane %v711_v47, 6  ;;  %v200_v1 = vperm.slane %v713_v48, 6 }
 0x17e   :  { %v128_v38 = vpop.permute.xlu2 %127 }
 0x17f   :  { %v130_v39 = vadd.f32 %v128_v38, %v123_v36  ;;  %v131_v40 = vadd.f32 %v128_v38, %v124_v37 }
 0x181   :  { %v673_v41 = vmax.f32 %v130_v39, 0.0  ;;  %v675_v42 = vmax.f32 %v131_v40, 0.0  ;;  %v144_v40 = vperm.slane %v711_v47, 0 }
 0x183   :  { %216 = vrot.lane.b32.xlu0 %v675_v42, %s611_s1  ;;  %203 = vrot.lane.b32.xlu1 %v673_v41, %s612_s10 }
 0x184   :  { %214 = vrot.lane.b32.xlu2 %v673_v41, %s611_s1 }
 0x18b   :  { %170 = vrot.lane.b32.xlu0 %v673_v41, %s609_s9  ;;  %192 = vrot.lane.b32.xlu1 %v673_v41, %s613_s11 }
 0x18c   :  { %205 = vrot.lane.b32.xlu2 %v675_v42, %s612_s10 }
 0x193   :  { %161 = vrot.lane.b32.xlu0 %v675_v42, %s614_s12  ;;  %181 = vrot.lane.b32.xlu1 %v673_v41, %s615_s13 }
 0x194   :  { %194 = vrot.lane.b32.xlu2 %v675_v42, %s613_s11 }
 0x19b   :  { %135 = vrot.lane.b32.xlu0 %v673_v41, %s616_s14  ;;  %172 = vrot.lane.b32.xlu1 %v675_v42, %s609_s9 }
 0x19c   :  { %183 = vrot.lane.b32.xlu2 %v675_v42, %s615_s13 }
 0x1a3   :  { %148 = vrot.lane.b32.xlu1 %v673_v41, %s607_s8 }
 0x1a4   :  { %159 = vrot.lane.b32.xlu2 %v673_v41, %s614_s12 }
 0x1ab   :  { %137 = vrot.lane.b32.xlu1 %v675_v42, %s616_s14 }
 0x1ac   :  { %150 = vrot.lane.b32.xlu2 %v675_v42, %s607_s8 }
 0x1de   :  { %v215_v43 = vpop.permute.xlu2 %214 }
 0x1e6   :  { %v206_v45 = vpop.permute.xlu2 %205 }
 0x1ee   :  { %v195_v59 = vpop.permute.xlu2 %194 }
 0x1f5   :  { %v217_v51 = vpop.permute.xlu0 %216  ;;  %v204_v52 = vpop.permute.xlu1 %203 }
 0x1f6   :  { %v208_v55 = vsel %vm207_vm4, %v204_v52, %v206_v45  ;;  %v209_v56 = vsel %vm207_vm4, %v206_v45, %v204_v52  ;;  %v219_v57 = vsel %vm218_vm5, %v215_v43, %v217_v51  ;;  %v220_v58 = vsel %vm218_vm5, %v217_v51, %v215_v43  ;;  %v184_v7 = vpop.permute.xlu2 %183 }
 0x1f7   :  { %v223_v60 = vmul.f32 %v717_v49, %v219_v57  ;;  %v224_v61 = vmul.f32 %v719_v50, %v220_v58  ;;  %v212_v62 = vmul.f32 %v210_v53, %v208_v55  ;;  %v213_v63 = vmul.f32 %v211_v54, %v209_v56  ;;  %v134_v55 = vld [vmem:[%s899_s2] sm:$0xff]  ;;  %s617_s2 = smov 2  }
 0x1f9   :  { %236 = vmatpush.msra.mxu0 %v223_v60  ;;  %256 = vmatpush.msra.mxu1 %v224_v61 }
 0x1fb   :  { %237 = vmatpush.msra.mxu0 %v212_v62  ;;  %257 = vmatpush.msra.mxu1 %v213_v63 }
 0x1fd   :  { %v193_v2 = vpop.permute.xlu1 %192  ;;  %v171_v8 = vpop.permute.xlu0 %170 }
 0x1fe   :  { %v197_v3 = vsel %vm196_vm6, %v193_v2, %v195_v59  ;;  %v198_v4 = vsel %vm196_vm6, %v195_v59, %v193_v2  ;;  %v160_v16 = vpop.permute.xlu2 %159 }
 0x1ff   :  { %v201_v5 = vmul.f32 %v199_v0, %v197_v3  ;;  %v202_v6 = vmul.f32 %v200_v1, %v198_v4 }
 0x201   :  { %238 = vmatpush.msra.mxu0 %v201_v5  ;;  %258 = vmatpush.msra.mxu1 %v202_v6 }
 0x205   :  { %v182_v11 = vpop.permute.xlu1 %181  ;;  %v162_v17 = vpop.permute.xlu0 %161 }
 0x206   :  { %v186_v12 = vsel %vm185_vm7, %v182_v11, %v184_v7  ;;  %v187_v13 = vsel %vm185_vm7, %v184_v7, %v182_v11  ;;  %v164_v23 = vsel %vm163_vm8, %v160_v16, %v162_v17  ;;  %v165_v24 = vsel %vm163_vm8, %v162_v17, %v160_v16  ;;  %v151_v34 = vpop.permute.xlu2 %150 }
 0x207   :  { %v190_v14 = vmul.f32 %v188_v9, %v186_v12  ;;  %v191_v15 = vmul.f32 %v189_v10, %v187_v13  ;;  %v168_v30 = vmul.f32 %v166_v21, %v165_v24  ;;  %v169_v31 = vmul.f32 %v167_v22, %v164_v23 }
 0x209   :  { %239 = vmatpush.msra.mxu0 %v190_v14  ;;  %259 = vmatpush.msra.mxu1 %v191_v15 }
 0x20b   :  { %240 = vmatpush.msra.mxu0 %v673_v41  ;;  %260 = vmatpush.msra.mxu1 %v675_v42  ;;  %v145_v41 = vperm.slane %v713_v48, 0 }
 0x20d   :  { %v173_v20 = vpop.permute.xlu1 %172  ;;  %v136_v42 = vpop.permute.xlu0 %135 }
 0x20e   :  { %v175_v25 = vsel %vm174_vm9, %v171_v8, %v173_v20  ;;  %v176_v26 = vsel %vm174_vm9, %v173_v20, %v171_v8 }
 0x20f   :  { %v179_v28 = vmul.f32 %v177_v18, %v176_v26  ;;  %v180_v29 = vmul.f32 %v178_v19, %v175_v25 }
 0x211   :  { %241 = vmatpush.msra.mxu0 %v179_v28  ;;  %261 = vmatpush.msra.mxu1 %v180_v29 }
 0x213   :  { %242 = vmatpush.msra.mxu0 %v168_v30  ;;  %262 = vmatpush.msra.mxu1 %v169_v31  ;;  %v619_v31 = vmov 2  }
 0x214   :  { %492 = vset.pattern.permute.xlu1 %v619_v31 }
 0x215   :  { %v149_v35 = vpop.permute.xlu1 %148 }
 0x216   :  { %v153_v36 = vsel %vm152_vm10, %v149_v35, %v151_v34  ;;  %v154_v37 = vsel %vm152_vm10, %v151_v34, %v149_v35 }
 0x217   :  { %v157_v38 = vmul.f32 %v155_v32, %v154_v37  ;;  %v158_v39 = vmul.f32 %v156_v33, %v153_v36  ;;  %v621_v36 = vmov 3  }
 0x218   :  { %494 = vset.pattern.permute.xlu0 %v621_v36 }
 0x219   :  { %243 = vmatpush.msra.mxu0 %v157_v38  ;;  %263 = vmatpush.msra.mxu1 %v158_v39 }
 0x21d   :  { %v138_v43 = vpop.permute.xlu1 %137 }
 0x21e   :  { %v142_v44 = vsel %vm141_vm11, %v136_v42, %v138_v43  ;;  %v143_v45 = vsel %vm141_vm11, %v138_v43, %v136_v42 }
 0x21f   :  { %v146_v51 = vmul.f32 %v144_v40, %v143_v45  ;;  %v147_v52 = vmul.f32 %v145_v41, %v142_v44 }
 0x221   :  { %244 = vmatpush.msra.mxu0 %v146_v51  ;;  %264 = vmatpush.msra.mxu1 %v147_v52 }
 0x222   :  { %466 = vmatmul.msk.f32.vlgmr.msra.gmra.mxu0 %vm225_vm12, %v134_v55  ;;  %467 = vmatmul.msk.f32.vlgmr.msra.gmra.mxu1 %vm225_vm12, %v134_v55 }
 0x29f   :  { %v246_v56 = vpop.f32.mrf.mxu0  ;;  %v266_v57 = vpop.f32.mrf.mxu1 }
 0x2a0   :  { %v272_v58 = vmul.f32 %v246_v56, %v246_v56  ;;  %v273_v59 = vmul.f32 %v266_v57, %v266_v57  ;;  %v269_v60 = vadd.f32 %v266_v57, %v246_v56 }
 0x2a2   :  { %270 = vadd.xlane.f32.xlu2 %v269_v60  ;;  %v274_v61 = vadd.f32 %v273_v59, %v272_v58 }
 0x2a4   :  { %275 = vadd.xlane.f32.xlu0 %v274_v61 }
 0x315   :  { %v271_v62 = vpop.xlane.xlu2 %270 }
 0x316   :  { %v278_v63 = vrot.slane %v271_v62, 4 }
 0x317   :  { %v276_v2 = vpop.xlane.xlu0 %275 }
 0x318   :  { %v280_v3 = vadd.f32 %v278_v63, %v271_v62  ;;  %v287_v4 = vrot.slane %v276_v2, 4 }
 0x31a   :  { %v282_v5 = vrot.slane %v280_v3, 4  ;;  %v289_v6 = vadd.f32 %v287_v4, %v276_v2 }
 0x31c   :  { %v284_v7 = vsel %vm86_vm0, %v280_v3, %v282_v5  ;;  %v291_v8 = vrot.slane %v289_v6, 4 }
 0x31d   :  { %v285_v11 = vmul.f32 0.001953125, %v284_v7 }
 0x31e   :  { %v293_v12 = vsel %vm86_vm0, %v289_v6, %v291_v8 }
 0x31f   :  { %v295_v13 = vmul.f32 %v285_v11, %v285_v11  ;;  %v294_v14 = vmul.f32 0.001953125, %v293_v12 }
 0x321   :  { %v296_v15 = vsub.f32 %v294_v14, %v295_v13 }
 0x323   :  { %v297_v16 = vadd.f32 1e-05, %v296_v15 }
 0x325   :  { %499 = vrsqrt.f32 %v297_v16  ;;  %vm304_vm14 = vweird.f32 %v297_v16 }
 0x32b   :  { %v500_v17 = vpop.eup %499 }
 0x32c   :  { %v299_v20 = vmul.f32 %v500_v17, %v297_v16  ;;  %vm305_vm13 = vweird.f32 %v500_v17 }
 0x32d   :  { %vm306_vm15 = vmor %vm304_vm14, %vm305_vm13 }
 0x32e   :  { %v300_v23 = vmul.f32 %v500_v17, %v299_v20 }
 0x330   :  { %v301_v24 = vmul.f32 0.5, %v300_v23 }
 0x332   :  { %v302_v25 = vsub.f32 1.5, %v301_v24 }
 0x334   :  { %v303_v26 = vmul.f32 %v500_v17, %v302_v25 }
 0x336   :  { %v307_v28 = vsel %vm306_vm15, %v500_v17, %v303_v26 }
 0x337   :  { %309 = vrot.lane.b32.xlu1 %v307_v28, %s617_s2 }
 0x3a9   :  { %v310_v29 = vpop.permute.xlu1 %309 }
 0x3aa   :  { %v312_v30 = vmul.f32 %v310_v29, %v668_v27 }
 0x3ac   :  { %314 = vrot.lane.b32.xlu1 %v312_v30, %s618_s17 }
 0x41e   :  { %v315_v34 = vpop.permute.xlu1 %314 }
 0x41f   :  { %v317_v35 = vmul.f32 %v315_v34, %v285_v11 }
 0x421   :  { %319 = vrot.lane.b32.xlu1 %v317_v35, %s620_s18 }
 0x429   :  { %324 = vperm.xlu1 %492, %v312_v30  }
 0x431   :  { %493 = vset.pattern.permute.xlu1 %v621_v36 }
 0x493   :  { %v320_v37 = vpop.permute.xlu1 %319 }
 0x494   :  { %v322_v38 = vsub.f32 %v668_v27, %v320_v37 }
 0x496   :  { %331 = vperm.xlu1 %493, %v322_v38   ;;  %v338_v38 = vld [vmem:[#allocation5] sm:$0xff] }
 0x49b   :  { %v325_v39 = vpop.permute.xlu1 %324 }
 0x49c   :  { %v327_v42 = vmul.f32 %v325_v39, %v246_v56  ;;  %v328_v43 = vmul.f32 %v325_v39, %v266_v57 }
 0x508   :  { %v332_v44 = vpop.permute.xlu1 %331 }
 0x509   :  { %v334_v45 = vadd.f32 %v332_v44, %v327_v42  ;;  %v335_v51 = vadd.f32 %v332_v44, %v328_v43 }
 0x50b   :  { %v336_v52 = vmax.f32 %v334_v45, 0.0  ;;  %v337_v55 = vmax.f32 %v335_v51, 0.0 }
 0x50d   :  { %397 = vrot.lane.b32.xlu0 %v337_v55, %s611_s1  ;;  %387 = vrot.lane.b32.xlu1 %v336_v52, %s612_s10 }
 0x50e   :  { %395 = vrot.lane.b32.xlu2 %v336_v52, %s611_s1 }
 0x515   :  { %371 = vrot.lane.b32.xlu0 %v336_v52, %s615_s13  ;;  %389 = vrot.lane.b32.xlu1 %v337_v55, %s612_s10 }
 0x516   :  { %381 = vrot.lane.b32.xlu2 %v337_v55, %s613_s11 }
 0x51d   :  { %365 = vrot.lane.b32.xlu0 %v337_v55, %s609_s9  ;;  %379 = vrot.lane.b32.xlu1 %v336_v52, %s613_s11 }
 0x51e   :  { %363 = vrot.lane.b32.xlu2 %v336_v52, %s609_s9 }
 0x525   :  { %347 = vrot.lane.b32.xlu0 %v336_v52, %s607_s8  ;;  %373 = vrot.lane.b32.xlu1 %v337_v55, %s615_s13 }
 0x526   :  { %357 = vrot.lane.b32.xlu2 %v337_v55, %s614_s12 }
 0x52d   :  { %341 = vrot.lane.b32.xlu0 %v337_v55, %s616_s14  ;;  %355 = vrot.lane.b32.xlu1 %v336_v52, %s614_s12 }
 0x52e   :  { %339 = vrot.lane.b32.xlu2 %v336_v52, %s616_s14 }
 0x535   :  { %349 = vrot.lane.b32.xlu1 %v337_v55, %s607_s8 }
 0x568   :  { %v396_v27 = vpop.permute.xlu2 %395 }
 0x570   :  { %v382_v4 = vpop.permute.xlu2 %381 }
 0x57f   :  { %v398_v56 = vpop.permute.xlu0 %397  ;;  %v388_v57 = vpop.permute.xlu1 %387 }
 0x580   :  { %v399_v58 = vsel %vm218_vm5, %v396_v27, %v398_v56  ;;  %v400_v59 = vsel %vm218_vm5, %v398_v56, %v396_v27 }
 0x581   :  { %v401_v60 = vmul.f32 %v717_v49, %v399_v58  ;;  %v402_v61 = vmul.f32 %v719_v50, %v400_v59 }
 0x583   :  { %413 = vmatpush.msra.mxu2 %v401_v60  ;;  %433 = vmatpush.msra.mxu3 %v402_v61 }
 0x587   :  { %v372_v62 = vpop.permute.xlu0 %371  ;;  %v390_v63 = vpop.permute.xlu1 %389 }
 0x588   :  { %v391_v2 = vsel %vm207_vm4, %v388_v57, %v390_v63  ;;  %v392_v3 = vsel %vm207_vm4, %v390_v63, %v388_v57 }
 0x589   :  { %v393_v5 = vmul.f32 %v391_v2, %v210_v53  ;;  %v394_v6 = vmul.f32 %v392_v3, %v211_v54  ;;  %v364_v53 = vpop.permute.xlu2 %363 }
 0x58b   :  { %414 = vmatpush.msra.mxu2 %v393_v5  ;;  %434 = vmatpush.msra.mxu3 %v394_v6 }
 0x58f   :  { %v380_v49 = vpop.permute.xlu1 %379  ;;  %v366_v8 = vpop.permute.xlu0 %365 }
 0x590   :  { %v383_v50 = vsel %vm196_vm6, %v380_v49, %v382_v4  ;;  %v384_v7 = vsel %vm196_vm6, %v382_v4, %v380_v49 }
 0x591   :  { %v385_v11 = vmul.f32 %v383_v50, %v199_v0  ;;  %v386_v12 = vmul.f32 %v384_v7, %v200_v1  ;;  %v367_v0 = vsel %vm174_vm9, %v364_v53, %v366_v8  ;;  %v368_v1 = vsel %vm174_vm9, %v366_v8, %v364_v53  ;;  %v358_v20 = vpop.permute.xlu2 %357 }
 0x592   :  { %v369_v23 = vmul.f32 %v368_v1, %v177_v18 }
 0x593   :  { %415 = vmatpush.msra.mxu2 %v385_v11  ;;  %435 = vmatpush.msra.mxu3 %v386_v12 }
 0x597   :  { %v374_v54 = vpop.permute.xlu1 %373  ;;  %v348_v17 = vpop.permute.xlu0 %347 }
 0x598   :  { %v375_v13 = vsel %vm185_vm7, %v372_v62, %v374_v54  ;;  %v376_v14 = vsel %vm185_vm7, %v374_v54, %v372_v62 }
 0x599   :  { %v377_v15 = vmul.f32 %v375_v13, %v188_v9  ;;  %v378_v16 = vmul.f32 %v376_v14, %v189_v10  ;;  %v370_v9 = vmul.f32 %v367_v0, %v178_v19  ;;  %v340_v29 = vpop.permute.xlu2 %339 }
 0x59b   :  { %416 = vmatpush.msra.mxu2 %v377_v15  ;;  %436 = vmatpush.msra.mxu3 %v378_v16 }
 0x59d   :  { %417 = vmatpush.msra.mxu2 %v336_v52  ;;  %437 = vmatpush.msra.mxu3 %v337_v55 }
 0x59f   :  { %v356_v24 = vpop.permute.xlu1 %355  ;;  %418 = vmatpush.msra.mxu2 %v369_v23  ;;  %438 = vmatpush.msra.mxu3 %v370_v9  ;;  %v342_v18 = vpop.permute.xlu0 %341 }
 0x5a0   :  { %v359_v10 = vsel %vm163_vm8, %v356_v24, %v358_v20  ;;  %v360_v25 = vsel %vm163_vm8, %v358_v20, %v356_v24  ;;  %v343_v30 = vsel %vm141_vm11, %v340_v29, %v342_v18  ;;  %v344_v31 = vsel %vm141_vm11, %v342_v18, %v340_v29 }
 0x5a1   :  { %v361_v26 = vmul.f32 %v360_v25, %v166_v21  ;;  %v362_v28 = vmul.f32 %v359_v10, %v167_v22  ;;  %v345_v36 = vmul.f32 %v344_v31, %v144_v40  ;;  %v346_v37 = vmul.f32 %v343_v30, %v145_v41 }
 0x5a3   :  { %419 = vmatpush.msra.mxu2 %v361_v26  ;;  %439 = vmatpush.msra.mxu3 %v362_v28 }
 0x5a7   :  { %v350_v19 = vpop.permute.xlu1 %349 }
 0x5a8   :  { %v351_v34 = vsel %vm152_vm10, %v348_v17, %v350_v19  ;;  %v352_v21 = vsel %vm152_vm10, %v350_v19, %v348_v17 }
 0x5a9   :  { %v353_v22 = vmul.f32 %v352_v21, %v155_v32  ;;  %v354_v35 = vmul.f32 %v351_v34, %v156_v33 }
 0x5ab   :  { %420 = vmatpush.msra.mxu2 %v353_v22  ;;  %440 = vmatpush.msra.mxu3 %v354_v35 }
 0x5ad   :  { %421 = vmatpush.msra.mxu2 %v345_v36  ;;  %441 = vmatpush.msra.mxu3 %v346_v37 }
 0x5ae   :  { %468 = vmatmul.msk.f32.vlgmr.msra.gmra.mxu2 %vm225_vm12, %v338_v38  ;;  %469 = vmatmul.msk.f32.vlgmr.msra.gmra.mxu3 %vm225_vm12, %v338_v38 }
 0x631   :  { %v423_v46 = vpop.f32.mrf.mxu2  ;;  %v443_v32 = vpop.f32.mrf.mxu3 }
 0x632   :  { %446 = vst [vmem:[#allocation8] sm:$0xff] %v423_v46 }
 0x633   :  { %447 = vst [vmem:[#allocation8 + $0x8] sm:$0xff] %v443_v32 }
 0x634   :  { %458 = dma.vmem_to_hbm [thread:$0]  %s454_s20, 256, %s456_s23, [#allocation4]  }
 0x635   :  { %601 = dma.done.wait [#allocation4], 256  }
 0x636   :  { %602 = vsyncadd [#allocation4], 4294967040 }
 0x637   :  { %463 = vsyncpa [#allocation3], 1 }
 0x638   :  { %464 = vsyncpa [#allocation6], 1 }
 0x639   :  { %465 = vsyncpa [#allocation4], 1 }

</bundles_post_ra>
